<compile_context>
chip_gen: v6e
topology: v6e:2x2x1
jax: 0.10.0
libtpu: 0.0.40
codegen_flags: <defaults>
</compile_context>

<pallas_src>
import functools

import jax
import jax.numpy as jnp
from jax.experimental import pallas as pl
from jax.experimental.pallas import tpu as pltpu

IN_FEATURES = 50
OUT_FEATURES = 10
NEGATIVE_SLOPE = 0.01
MAX_TB = 1024  # rows per batch tile (cap)


def _round_up(x, m):
    return ((x + m - 1) // m) * m


def _cdiv(a, b):
    return -(-a // b)


def _linear_leakyrelu_kernel(x_ref, w_ref, b_ref, o_ref, *, negative_slope):
    # x_ref: [tb, 50], w_ref: [50, 10], b_ref: [1, 10], o_ref: [tb, 10]
    y = jnp.dot(x_ref[...], w_ref[...], preferred_element_type=jnp.float32)
    y = y + b_ref[...]                       # bias broadcast over rows (f32)
    # leaky-ReLU: single vmul + vmax (== where(y > 0, y, y * slope))
    o_ref[...] = jnp.maximum(y, y * negative_slope).astype(o_ref.dtype)


def make_linear_leaky_relu(w, b, negative_slope=NEGATIVE_SLOPE):
    """Build a callable x:[B, 50] -> [B, 10].

    w: [OUT_FEATURES, IN_FEATURES] (PyTorch Linear layout), b: [OUT_FEATURES].
    Weight/bias are transposed / reshaped ONCE here (not per call), kept at
    their natural (un-padded) sizes.
    """
    out_f, in_f = w.shape
    assert (out_f, in_f) == (OUT_FEATURES, IN_FEATURES)

    w_t = jnp.asarray(w, jnp.float32).T            # [50, 10]
    b2 = jnp.asarray(b, jnp.float32).reshape(1, out_f)  # [1, 10]

    kernel = functools.partial(
        _linear_leakyrelu_kernel, negative_slope=negative_slope
    )

    def forward(x):
        B, in_dim = x.shape
        assert in_dim == IN_FEATURES
        x = x.astype(jnp.float32)

        if B <= MAX_TB:
            # Single block: block dims == full array dims (always legal,
            # even for B=1).  No row padding, no output slicing.
            tb, rows, grid_n = B, B, 1
        else:
            # Split rows evenly into the minimal number of <=MAX_TB tiles,
            # each a multiple of 8 -> grid >= 2 (v7x megacore) and worst-case
            # padding waste < 8 rows per tile.
            rows8 = _round_up(B, 8)
            grid_n = _cdiv(rows8, MAX_TB)
            tb = _round_up(_cdiv(rows8, grid_n), 8)
            rows = tb * grid_n

        if rows != B:
            x_in = jnp.zeros((rows, IN_FEATURES), jnp.float32).at[:B].set(x)
        else:
            x_in = x

        cost = pl.CostEstimate(
            flops=2 * rows * IN_FEATURES * OUT_FEATURES,
            transcendentals=0,
            bytes_accessed=4 * (
                rows * IN_FEATURES           # x
                + IN_FEATURES * OUT_FEATURES  # w
                + OUT_FEATURES                # b
                + rows * OUT_FEATURES         # out
            ),
        )

        out = pl.pallas_call(
            kernel,
            out_shape=jax.ShapeDtypeStruct((rows, OUT_FEATURES), jnp.float32),
            grid_spec=pltpu.PrefetchScalarGridSpec(
                num_scalar_prefetch=0,
                grid=(grid_n,),
                in_specs=[
                    pl.BlockSpec((tb, IN_FEATURES), lambda i: (i, 0)),
                    # weight/bias stay VMEM-resident across the whole grid
                    pl.BlockSpec((IN_FEATURES, OUT_FEATURES), lambda i: (0, 0)),
                    pl.BlockSpec((1, OUT_FEATURES), lambda i: (0, 0)),
                ],
                out_specs=pl.BlockSpec((tb, OUT_FEATURES), lambda i: (i, 0)),
            ),
            compiler_params=pltpu.CompilerParams(
                dimension_semantics=("parallel",),
            ),
            cost_estimate=cost,
        )(x_in, w_t, b2)

        return out if rows == B else out[:B]

    return jax.jit(forward)


def reference(x, w, b, negative_slope=NEGATIVE_SLOPE):
    y = x.astype(jnp.float32) @ w.T.astype(jnp.float32) + b.astype(jnp.float32)
    return jnp.where(y > 0, y, y * negative_slope)


if __name__ == "__main__":
    key = jax.random.PRNGKey(0)
    kx, kw, kb, kx2, kx3 = jax.random.split(key, 5)

    # Deterministic Linear(50, 10) init (PyTorch-style uniform bound 1/sqrt(IN)).
    bound = 1.0 / (IN_FEATURES ** 0.5)
    w = jax.random.uniform(
        kw, (OUT_FEATURES, IN_FEATURES), minval=-bound, maxval=bound,
        dtype=jnp.float32)
    b = jax.random.uniform(
        kb, (OUT_FEATURES,), minval=-bound, maxval=bound, dtype=jnp.float32)

    fwd = make_linear_leaky_relu(w, b)

    # Shape matching the module's usage: x = torch.randn(1, 50)
    x1 = jax.random.normal(kx, (1, IN_FEATURES), dtype=jnp.float32)
    out1 = jax.block_until_ready(fwd(x1))
    ref1 = reference(x1, w, b)
    assert out1.shape == (1, OUT_FEATURES)
    assert jnp.allclose(out1, ref1, atol=1e-5, rtol=1e-5), (out1, ref1)

    # Small batch (single-block path, no padding, no slicing).
    x2 = jax.random.normal(kx2, (64, IN_FEATURES), dtype=jnp.float32)
    out2 = jax.block_until_ready(fwd(x2))
    ref2 = reference(x2, w, b)
    assert out2.shape == (64, OUT_FEATURES)
    assert jnp.allclose(out2, ref2, atol=1e-5, rtol=1e-5)

    # Non-multiple-of-8 batch still within the single-block path.
    x3 = jax.random.normal(kx3, (13, IN_FEATURES), dtype=jnp.float32)
    out3 = jax.block_until_ready(fwd(x3))
    ref3 = reference(x3, w, b)
    assert out3.shape == (13, OUT_FEATURES)
    assert jnp.allclose(out3, ref3, atol=1e-5, rtol=1e-5)

    print("KERNEL_OK")
</pallas_src>

<mosaic_0001>
module attributes {stable_mosaic.version = 11 : i64} {
  func.func @_linear_leakyrelu_kernel(%arg0: i32, %arg1: memref<1x50xf32, #tpu.memory_space<vmem>>, %arg2: memref<50x10xf32, #tpu.memory_space<vmem>>, %arg3: memref<1x10xf32, #tpu.memory_space<vmem>>, %arg4: memref<1x10xf32, #tpu.memory_space<vmem>>) attributes {dimension_semantics = [#tpu.dimension_semantics<parallel>], iteration_bounds = array<i64: 1>, scalar_prefetch = 0 : i64, scratch_operands = 0 : i64, tpu.core_type = #tpu.core_type<tc>, window_params = [{transform_indices = @transform_0, window_bounds = array<i64: 1, 50>}, {pipeline_mode = #tpu.pipeline_mode<synchronous>, transform_indices = @transform_1, window_bounds = array<i64: 50, 10>}, {pipeline_mode = #tpu.pipeline_mode<synchronous>, transform_indices = @transform_2, window_bounds = array<i64: 1, 10>}, {transform_indices = @transform_3, window_bounds = array<i64: 1, 10>}]} {
    %c0 = arith.constant 0 : index
    %c0_0 = arith.constant 0 : index
    %0 = vector.load %arg1[%c0, %c0_0] : memref<1x50xf32, #tpu.memory_space<vmem>>, vector<1x50xf32>
    %c0_1 = arith.constant 0 : index
    %c0_2 = arith.constant 0 : index
    %1 = vector.load %arg2[%c0_1, %c0_2] : memref<50x10xf32, #tpu.memory_space<vmem>>, vector<50x10xf32>
    %cst = arith.constant dense<0.000000e+00> : vector<1x10xf32>
    %2 = tpu.matmul %0, %1, %cst {dimension_numbers = #tpu.dot_dimension_numbers<[1], [0], [0], [1], [0, 0, 1, 1], [], []>} : vector<1x50xf32>, vector<50x10xf32>, vector<1x10xf32> -> vector<1x10xf32>
    %c0_3 = arith.constant 0 : index
    %c0_4 = arith.constant 0 : index
    %3 = vector.load %arg3[%c0_3, %c0_4] : memref<1x10xf32, #tpu.memory_space<vmem>>, vector<1x10xf32>
    %4 = arith.addf %2, %3 : vector<1x10xf32>
    %cst_5 = arith.constant 0.00999999977 : f32
    %5 = vector.broadcast %cst_5 : f32 to vector<1x10xf32>
    %6 = arith.mulf %4, %5 : vector<1x10xf32>
    %7 = arith.maximumf %4, %6 : vector<1x10xf32>
    %c0_6 = arith.constant 0 : index
    %c0_7 = arith.constant 0 : index
    %8 = vector.load %arg4[%c0_6, %c0_7] : memref<1x10xf32, #tpu.memory_space<vmem>>, vector<1x10xf32>
    tpu.vector_store %arg4[%c0_6, %c0_7], %7 {strides = array<i32>} : memref<1x10xf32, #tpu.memory_space<vmem>>, vector<1x10xf32>,
    return
  }
  func.func @transform_0(%arg0: i32) -> (i32, i32) {
    %c0_i32 = arith.constant 0 : i32
    %c0_i32_0 = arith.constant 0 : i32
    return %arg0, %c0_i32 : i32, i32
  }
  func.func @transform_1(%arg0: i32) -> (i32, i32) {
    %c0_i32 = arith.constant 0 : i32
    %c0_i32_0 = arith.constant 0 : i32
    %c0_i32_1 = arith.constant 0 : i32
    return %c0_i32, %c0_i32_0 : i32, i32
  }
  func.func @transform_2(%arg0: i32) -> (i32, i32) {
    %c0_i32 = arith.constant 0 : i32
    %c0_i32_0 = arith.constant 0 : i32
    %c0_i32_1 = arith.constant 0 : i32
    return %c0_i32, %c0_i32_0 : i32, i32
  }
  func.func @transform_3(%arg0: i32) -> (i32, i32) {
    %c0_i32 = arith.constant 0 : i32
    %c0_i32_0 = arith.constant 0 : i32
    return %arg0, %c0_i32 : i32, i32
  }
}

</mosaic_0001>

<bundles_post_ra>
// kernel: forward.1
= control target key start
LH: loop header
LB: loop body
LE: loop exit
PB: predicated region body
PF: predicated region fallthrough
CT: control target
= control target key end

     0   :  { %8 = vsyncpa [#allocation3], 0  ;;  %s287_s0 = inlined_call_operand.hbm [shape: f32[1,50], index: 0, kind: input, shape index: {}]   ;;  %s288_s1 = inlined_call_operand.hbm [shape: f32[50,10], index: 1, kind: input, shape index: {}]   ;;  %s289_s2 = inlined_call_operand.vmem [shape: f32[1,10], index: 2, kind: input, shape index: {}]   ;;  %s290_s3 = inlined_call_operand.hbm [shape: f32[1,10], index: 3, kind: output, shape index: {}]  }
   0x1   :  { %9 = vsyncpa [#allocation6], 0 }
   0x2   :  { %10 = vsyncpa [#allocation4], 0  ;;  %s248_s12 = smov [#allocation2]   ;;  %s249_s14 = smov [#allocation5]  }
   0x3   :  { %s17_s13 = sshll.u32 %s248_s12, 4  ;;  %s26_s15 = sshll.u32 %s249_s14, 4  ;;  %s18_s13 = int_to_ptr.vmem [resolvable:$true] %s17_s13  ;;  %s27_s15 = int_to_ptr.vmem [resolvable:$true] %s26_s15 }
   0x4   :  { %s190_s16 = scalar_lea.vmem %s18_s13, 16  ;;  %s194_s17 = scalar_lea.vmem %s18_s13, 32 }
   0x5   :  { %p191_p0 = scmp.ne.s32.totalorder %s18_s13, %s190_s16  ;;  %p195_p1 = scmp.lt.s32.totalorder %s18_s13, %s18_s13 }
   0x6   :  { %p196_p2 = scmp.lt.s32.totalorder %s194_s17, %s190_s16 }
   0x8   :  { %p197_p3 = por %p196_p2, %p195_p1 }
   0xa   :  { %p198_p4 = pnand %p197_p3, %p191_p0 }
   0xc   :  { %201 = shalt.err (!%p198_p4)
}
   0xd   :  { %20 = dma.hbm_to_vmem [thread:$0]  %s287_s0, 16, %s18_s13, [#allocation3]  }
   0xe   :  { %s210_s20 = scalar_lea.vmem %s27_s15, 896  ;;  %p215_p6 = scmp.lt.s32.totalorder %s27_s15, %s27_s15 }
   0xf   :  { %p211_p5 = scmp.ne.s32.totalorder %s27_s15, %s210_s20  ;;  %p216_p7 = scmp.lt.s32.totalorder %s210_s20, %s210_s20 }
  0x11   :  { %p217_p8 = por %p216_p7, %p215_p6 }
  0x13   :  { %p218_p9 = pnand %p217_p8, %p211_p5 }
  0x15   :  { %221 = shalt.err (!%p218_p9)
}
  0x16   :  { %s250_s21 = smov 128   ;;  %s251_s22 = smov 8  }
  0x17   :  { %32 = dma.hbm_to_vmem [thread:$0]  %s288_s1, 896, %s27_s15, [#allocation6], %s250_s21, %s250_s21, %s251_s22  }
  0x18   :  { %242 = dma.done.wait [#allocation3], 16  }
  0x19   :  { %243 = vsyncadd [#allocation3], 4294967280 }
  0x1a   :  { %244 = dma.done.wait [#allocation6], 896  }
  0x1b   :  { %245 = vsyncadd [#allocation6], 4294966400  ;;  %v252_v0 = vmov 0.0   ;;  %vm253_vm0 = vmmov 0   ;;  %vm54_vm1 = vcmask 1041408   ;;  %v47_v2 = vld [vmem:[#allocation5 + $0x28] sm:$0xff] }
  0x1c   :  { %158 = vmatprep.subr.mxu0 %v252_v0  ;;  %172 = vmatprep.mubr.msk.f32.mxu0 %vm253_vm0, %v252_v0  ;;  %v48_v1 = vld [vmem:[#allocation5 + $0x30] sm:$0x3]  ;;  %v46_v3 = vld [vmem:[#allocation5 + $0x20] sm:$0xff]  ;;  %v45_v4 = vld [vmem:[#allocation5 + $0x18] sm:$0xff]  ;;  %vm50_vm2 = vcmask 408576   ;;  %s254_s25 = smov [#allocation7]  }
  0x1d   :  { %159 = vmatpush3.msk.msra.mxu0 %vm54_vm1, %v48_v1  ;;  %v44_v5 = vld [vmem:[#allocation5 + $0x10] sm:$0xff]  ;;  %v43_v6 = vld [vmem:[#allocation5 + $0x8] sm:$0xff]  ;;  %v42_v7 = vld [vmem:[#allocation5] sm:$0xff]  ;;  %s138_s26 = sshll.u32 %s254_s25, 4  ;;  %vm130_vm3 = vcmask 73728   ;;  %s139_s26 = int_to_ptr.vmem [resolvable:$true] %s138_s26 }
  0x1e   :  { %160 = vmatprep.subr.mxu0 %v252_v0  ;;  %v41_v8 = vld [vmem:[#allocation2] sm:$0x1]  ;;  %s222_s27 = scalar_lea.vmem %s139_s26, 16  ;;  %s226_s28 = scalar_lea.vmem %s139_s26, 32 }
  0x1f   :  { %161 = vmatpush3.msra.mxu0 %v47_v2  ;;  %v49_v9 = vld [vmem:[%s289_s2] sm:$0x1]  ;;  %p223_p10 = scmp.ne.s32.totalorder %s139_s26, %s222_s27  ;;  %p227_p11 = scmp.lt.s32.totalorder %s139_s26, %s139_s26 }
  0x20   :  { %162 = vmatprep.subr.mxu0 %v252_v0  ;;  %p228_p12 = scmp.lt.s32.totalorder %s226_s28, %s222_s27 }
  0x21   :  { %163 = vmatpush3.msra.mxu0 %v46_v3 }
  0x22   :  { %164 = vmatprep.subr.mxu0 %v252_v0  ;;  %p229_p13 = por %p228_p12, %p227_p11 }
  0x23   :  { %165 = vmatpush3.msra.mxu0 %v45_v4 }
  0x24   :  { %166 = vmatprep.subr.mxu0 %v252_v0  ;;  %p230_p0 = pnand %p229_p13, %p223_p10 }
  0x25   :  { %167 = vmatpush3.msra.mxu0 %v44_v5 }
  0x26   :  { %168 = vmatprep.subr.mxu0 %v252_v0 }
  0x27   :  { %169 = vmatpush3.msra.mxu0 %v43_v6 }
  0x28   :  { %170 = vmatprep.subr.mxu0 %v252_v0 }
  0x29   :  { %171 = vmatpush3.msra.mxu0 %v42_v7 }
  0x2a   :  { %173 = vmatmul.mubr.msk.f32.vlgmr.msra.gmra.mxu0 %vm50_vm2, %v41_v8 }
  0xea   :  { %v124_v10 = vpop.f32.mrf.mxu0 }
  0xeb   :  { %v125_v11 = vadd.f32 %v124_v10, %v49_v9 }
  0xec   :  { %v174_v12 = vpop.f32.mrf.mxu0 }
  0xed   :  { %v128_v13 = vmul.f32 0.01, %v125_v11 }
  0xef   :  { %v129_v14 = vmax.f32 %v125_v11, %v128_v13 }
  0xf1   :  { %131 = vst.msk [vmem:[#allocation7] sm:$0x1] %vm130_vm3, %v129_v14 }
  0xf2   :  { %233 = shalt.err (!%p230_p0)
}
  0xf3   :  { %141 = dma.vmem_to_hbm [thread:$0]  %s139_s26, 16, %s290_s3, [#allocation4]  }
  0xf4   :  { %246 = dma.done.wait [#allocation4], 16  }
  0xf5   :  { %247 = vsyncadd [#allocation4], 4294967280 }
  0xf6   :  { %145 = vsyncpa [#allocation3], 1 }
  0xf7   :  { %146 = vsyncpa [#allocation6], 1 }
  0xf8   :  { %147 = vsyncpa [#allocation4], 1 }

</bundles_post_ra>
